<compile_context>
chip_gen: v5e
topology: v5e:2x2
jax: 0.10.0
libtpu: 0.0.40
codegen_flags: <defaults>
</compile_context>

<pallas_src>
import functools

import jax
import jax.numpy as jnp
from jax.experimental import pallas as pl
from jax.experimental.pallas import tpu as pltpu


def _numeric_proj_kernel(x_ref, w_ref, b_ref, o_ref):
    # x_ref: (TB, num_inputs)
    # w_ref: (num_inputs, out_width_padded)   -- block-diagonal, VMEM-resident
    # b_ref: (1, out_width_padded)            -- VMEM-resident
    # o_ref: (TB, out_width_padded)           -- lane-dense output slab
    acc = jnp.dot(x_ref[...], w_ref[...], preferred_element_type=jnp.float32)
    o_ref[...] = (acc + b_ref[...]).astype(o_ref.dtype)


def prepare_numeric_projection_params(weight, bias):
    """Build the block-diagonal weight and flattened bias ONCE per weight update.

    weight, bias: (num_inputs, state_size); weight[i] == PyTorch W_i[:, 0].
    Returns (w_bd, b_flat) with the last dim zero-padded to a multiple of 128.
    """
    num_inputs, state_size = weight.shape
    out_width = num_inputs * state_size
    out_width_padded = ((out_width + 127) // 128) * 128

    # TODO(synk): for num_inputs beyond ~64 the block-diag resident weight is
    # mostly zeros (num_inputs^2*state_size elements); switch to a per-input
    # grid axis / non-block-diag formulation at that scale.
    eye = jnp.eye(num_inputs, dtype=weight.dtype)
    w_bd = (eye[:, :, None] * weight[None, :, :]).reshape(num_inputs, out_width)
    b_flat = bias.reshape(1, out_width)

    if out_width_padded != out_width:
        pad = out_width_padded - out_width
        w_bd = jnp.pad(w_bd, ((0, 0), (0, pad)))
        b_flat = jnp.pad(b_flat, ((0, 0), (0, pad)))
    return w_bd, b_flat


def numeric_input_transformation(x, w_bd, b_flat, *, num_inputs, state_size,
                                 out_dtype=None):
    """x: (batch, num_inputs). w_bd/b_flat from prepare_numeric_projection_params.

    Returns a (batch, num_inputs, state_size) array; result[:, i, :] is the i-th
    projection (equivalent to the PyTorch module's list element i).
    """
    batch, ni = x.shape
    assert ni == num_inputs
    out_width = num_inputs * state_size
    out_width_padded = w_bd.shape[1]
    out_dtype = x.dtype if out_dtype is None else out_dtype
    out_bytes = jnp.dtype(out_dtype).itemsize

    # --- batch tile selection -------------------------------------------------
    # Target >= ~2 MiB of output per grid step so the ~0.35 us fixed per-step
    # cost is <10-20% of step time; cap at 4096 rows, multiple of 8.
    target_out_bytes = 2 * 1024 * 1024
    tb_budget = target_out_bytes // max(1, out_width_padded * out_bytes)
    tb_budget = max(8, min(4096, (tb_budget // 8) * 8))
    tb = batch if batch <= tb_budget else tb_budget
    # For large batches make sure there are >= 2 grid steps so the "parallel"
    # batch axis shards across both v7x TensorCores (no effect on v5e/v6e).
    if batch > 256 and pl.cdiv(batch, tb) < 2:
        tb = max(8, ((-(-batch // 2)) + 7) // 8 * 8)
    grid = (pl.cdiv(batch, tb),)

    # --- VMEM footprint (double-buffered x/out tiles + resident W/b) -----------
    x_bytes = jnp.dtype(x.dtype).itemsize
    x_lane_padded = max(128, ((num_inputs + 127) // 128) * 128)
    est_vmem = (2 * tb * x_lane_padded * x_bytes
                + 2 * tb * out_width_padded * out_bytes
                + 2 * (max(8, num_inputs) + 8) * out_width_padded
                * jnp.dtype(w_bd.dtype).itemsize)
    cp_kwargs = dict(dimension_semantics=("parallel",))
    if est_vmem > 12 * 1024 * 1024:  # keep headroom vs v5e's 16 MiB scoped default
        cp_kwargs["vmem_limit_bytes"] = int(est_vmem * 1.5)

    out = pl.pallas_call(
        _numeric_proj_kernel,
        out_shape=jax.ShapeDtypeStruct((batch, out_width_padded), out_dtype),
        grid=grid,
        in_specs=[
            pl.BlockSpec((tb, num_inputs), lambda b: (b, 0)),
            pl.BlockSpec((num_inputs, out_width_padded), lambda b: (0, 0)),  # resident
            pl.BlockSpec((1, out_width_padded), lambda b: (0, 0)),           # resident
        ],
        out_specs=pl.BlockSpec((tb, out_width_padded), lambda b: (b, 0)),
        compiler_params=pltpu.CompilerParams(**cp_kwargs),
    )(x, w_bd, b_flat)

    if out_width_padded != out_width:
        out = out[:, :out_width]
    # Zero-copy reshape; callers index result[:, i, :] for projection i.
    return out.reshape(batch, num_inputs, state_size)


if __name__ == "__main__":
    num_inputs = 4
    state_size = 32
    batch = 8

    key = jax.random.PRNGKey(0)
    kx, kw, kb = jax.random.split(key, 3)

    # PyTorch nn.Linear(1, S) init: U(-1/sqrt(fan_in), 1/sqrt(fan_in)), fan_in=1.
    x = jax.random.normal(kx, (batch, num_inputs), dtype=jnp.float32)
    weight = jax.random.uniform(kw, (num_inputs, state_size),
                                minval=-1.0, maxval=1.0, dtype=jnp.float32)
    bias = jax.random.uniform(kb, (num_inputs, state_size),
                              minval=-1.0, maxval=1.0, dtype=jnp.float32)

    # Built once per weight update (hoisted out of the per-step hot path).
    w_bd, b_flat = prepare_numeric_projection_params(weight, bias)

    fwd = jax.jit(functools.partial(numeric_input_transformation,
                                    num_inputs=num_inputs, state_size=state_size))
    result = fwd(x, w_bd, b_flat)
    result = jax.block_until_ready(result)

    # Reference check of the per-column Linear(1, state_size) semantics.
    ok = result.shape == (batch, num_inputs, state_size)
    for i in range(num_inputs):
        ref_i = x[:, i:i + 1] * weight[i][None, :] + bias[i][None, :]
        ok = ok and bool(jnp.allclose(result[:, i, :], ref_i, atol=1e-5, rtol=1e-5))

    if ok:
        print("KERNEL_OK")
    else:
        raise SystemExit("mismatch vs reference")
</pallas_src>

<mosaic_0001>
module attributes {stable_mosaic.version = 11 : i64} {
  func.func @_numeric_proj_kernel(%arg0: i32, %arg1: memref<8x4xf32, #tpu.memory_space<vmem>>, %arg2: memref<4x128xf32, #tpu.memory_space<vmem>>, %arg3: memref<1x128xf32, #tpu.memory_space<vmem>>, %arg4: memref<8x128xf32, #tpu.memory_space<vmem>>) attributes {dimension_semantics = [#tpu.dimension_semantics<parallel>], iteration_bounds = array<i64: 1>, scalar_prefetch = 0 : i64, scratch_operands = 0 : i64, tpu.core_type = #tpu.core_type<tc>, window_params = [{transform_indices = @transform_0, window_bounds = array<i64: 8, 4>}, {pipeline_mode = #tpu.pipeline_mode<synchronous>, transform_indices = @transform_1, window_bounds = array<i64: 4, 128>}, {pipeline_mode = #tpu.pipeline_mode<synchronous>, transform_indices = @transform_2, window_bounds = array<i64: 1, 128>}, {transform_indices = @transform_3, window_bounds = array<i64: 8, 128>}]} {
    %c0 = arith.constant 0 : index
    %c0_0 = arith.constant 0 : index
    %0 = vector.load %arg1[%c0, %c0_0] : memref<8x4xf32, #tpu.memory_space<vmem>>, vector<8x4xf32>
    %c0_1 = arith.constant 0 : index
    %c0_2 = arith.constant 0 : index
    %1 = vector.load %arg2[%c0_1, %c0_2] : memref<4x128xf32, #tpu.memory_space<vmem>>, vector<4x128xf32>
    %cst = arith.constant dense<0.000000e+00> : vector<8x128xf32>
    %2 = tpu.matmul %0, %1, %cst {dimension_numbers = #tpu.dot_dimension_numbers<[1], [0], [0], [1], [0, 0, 1, 1], [], []>} : vector<8x4xf32>, vector<4x128xf32>, vector<8x128xf32> -> vector<8x128xf32>
    %c0_3 = arith.constant 0 : index
    %c0_4 = arith.constant 0 : index
    %3 = vector.load %arg3[%c0_3, %c0_4] : memref<1x128xf32, #tpu.memory_space<vmem>>, vector<1x128xf32>
    %4 = vector.broadcast %3 : vector<1x128xf32> to vector<8x128xf32>
    %5 = arith.addf %2, %4 : vector<8x128xf32>
    %c0_5 = arith.constant 0 : index
    %c0_6 = arith.constant 0 : index
    %6 = vector.load %arg4[%c0_5, %c0_6] : memref<8x128xf32, #tpu.memory_space<vmem>>, vector<8x128xf32>
    tpu.vector_store %arg4[%c0_5, %c0_6], %5 {strides = array<i32>} : memref<8x128xf32, #tpu.memory_space<vmem>>, vector<8x128xf32>,
    return
  }
  func.func @transform_0(%arg0: i32) -> (i32, i32) {
    %c0_i32 = arith.constant 0 : i32
    %c0_i32_0 = arith.constant 0 : i32
    return %arg0, %c0_i32 : i32, i32
  }
  func.func @transform_1(%arg0: i32) -> (i32, i32) {
    %c0_i32 = arith.constant 0 : i32
    %c0_i32_0 = arith.constant 0 : i32
    %c0_i32_1 = arith.constant 0 : i32
    return %c0_i32, %c0_i32_0 : i32, i32
  }
  func.func @transform_2(%arg0: i32) -> (i32, i32) {
    %c0_i32 = arith.constant 0 : i32
    %c0_i32_0 = arith.constant 0 : i32
    %c0_i32_1 = arith.constant 0 : i32
    return %c0_i32, %c0_i32_0 : i32, i32
  }
  func.func @transform_3(%arg0: i32) -> (i32, i32) {
    %c0_i32 = arith.constant 0 : i32
    %c0_i32_0 = arith.constant 0 : i32
    return %arg0, %c0_i32 : i32, i32
  }
}

</mosaic_0001>

<bundles_post_ra>
// kernel: numeric_input_transformation.1
= control target key start
LH: loop header
LB: loop body
LE: loop exit
PB: predicated region body
PF: predicated region fallthrough
CT: control target
= control target key end

     0   :  { %vm24_vm0 = vcmask 1043456   ;;  %vm20_vm1 = vcmask 31744   ;;  %s88_s1 = inlined_call_operand.vmem [shape: f32[4,128], index: 1, kind: input, shape index: {}]   ;;  %s89_s0 = inlined_call_operand.vmem [shape: f32[8,4], index: 0, kind: input, shape index: {}]   ;;  %s90_s2 = inlined_call_operand.vmem [shape: f32[1,128], index: 2, kind: input, shape index: {}]   ;;  %s91_s3 = inlined_call_operand.vmem [shape: f32[8,128], index: 3, kind: output, shape index: {}]  }
   0x1   :  { %v15_v0 = vld [vmem:[%s88_s1] sm:$0xf] }
   0x2   :  { %v14_v1 = vld [vmem:[%s89_s0] sm:$0xff]  ;;  %53 = vmatpush.msk.msra.mxu0 %vm24_vm0, %v15_v0 }
   0x3   :  { %54 = vmatmul.msk.f32.vlgmr.msra.gmra.mxu0 %vm20_vm1, %v14_v1  ;;  %v55_v2 = vld [vmem:[%s90_s2] ss:$0 sm:$0xff] }
  0x80   :  { %v45_v3 = vpop.f32.mrf.mxu0 }
  0x81   :  { %v46_v4 = vadd.f32 %v55_v2, %v45_v3 }
  0x83   :  { %48 = vst [vmem:[%s91_s3] sm:$0xff] %v46_v4 }

</bundles_post_ra>
